<compile_context>
chip_gen: v5e
topology: v5e:2x2
jax: 0.10.0
libtpu: 0.0.40
codegen_flags: <defaults>
</compile_context>

<pallas_src>
import jax
import jax.numpy as jnp
from jax.experimental import pallas as pl
from jax.experimental.pallas import tpu as pltpu

IN_FEATURES = 28 * 28   # 784
HIDDEN = 100
OUT_FEATURES = 10

HIDDEN_PAD = 128        # lane-dense hidden width (cols 100..127 are zero)
OUT_PAD = 128           # lane-dense output width (cols 10..127 are zero)
MAX_BLOCK_B = 2048      # batch tile cap; ~7.7 MB VMEM footprint with bf16 x/out
ROW_MULTIPLE = 16       # bf16 sublane packing is (16, 128)


def _round_up(n, m):
    return ((n + m - 1) // m) * m


def _choose_tile(batch):
    """Pick (tb, padded_b, n_tiles): tb a multiple of 16, padding small, and
    >= 2 grid steps whenever there is more than one sublane-group of work so
    v7x's second TensorCore is not idle."""
    n_tiles = max(pl.cdiv(batch, MAX_BLOCK_B), 1)
    if batch > ROW_MULTIPLE:
        n_tiles = max(n_tiles, 2)
    tb = _round_up(pl.cdiv(batch, n_tiles), ROW_MULTIPLE)
    padded_b = n_tiles * tb
    return tb, padded_b, n_tiles


def ann_fc_kernel(x_ref, w1_ref, b1_ref, w2_ref, b2_ref, o_ref):
    # x = relu(x.view(B, -1)) -- x arrives bf16; relu commutes with the cast.
    x = jnp.maximum(x_ref[...], 0.0)
    # fc1: bf16 x bf16 on the MXU, f32 accumulation; bias + relu in f32 (VPU).
    h = jnp.dot(x, w1_ref[...], preferred_element_type=jnp.float32)
    h = jnp.maximum(h + b1_ref[...], 0.0)
    # fc2: bf16 x bf16 on the MXU, f32 accumulation; bias add in f32.
    o = jnp.dot(h.astype(jnp.bfloat16), w2_ref[...],
                preferred_element_type=jnp.float32)
    # Lane-dense bf16 store (width 128 -> unmasked vst).
    o_ref[...] = (o + b2_ref[...]).astype(o_ref.dtype)


def ann_fc_forward(x_nchw, w1_bf16, b1, w2_bf16, b2):
    """x_nchw: (B, 1, 28, 28) float32 -> (B, 10) float32.

    w1_bf16: (784, 128) bf16, b1: (1, 128) f32,
    w2_bf16: (128, 128) bf16, b2: (1, 128) f32   (see prepare_params).
    """
    B = x_nchw.shape[0]
    # == torch .view(B, -1); relu is applied in-kernel (commutes with the cast).
    x_flat = x_nchw.reshape(B, -1).astype(jnp.bfloat16)

    tb, padded_b, n_tiles = _choose_tile(B)
    if padded_b != B:
        x_flat = jnp.pad(x_flat, ((0, padded_b - B), (0, 0)))
    grid = (n_tiles,)

    flops = 2 * padded_b * (IN_FEATURES * HIDDEN_PAD + HIDDEN_PAD * OUT_PAD)
    bytes_accessed = (
        padded_b * IN_FEATURES * 2            # x in (bf16)
        + IN_FEATURES * HIDDEN_PAD * 2        # w1 (bf16)
        + HIDDEN_PAD * OUT_PAD * 2            # w2 (bf16)
        + (HIDDEN_PAD + OUT_PAD) * 4          # biases (f32)
        + padded_b * OUT_PAD * 2              # out (bf16)
    )

    out_padded = pl.pallas_call(
        ann_fc_kernel,
        out_shape=jax.ShapeDtypeStruct((padded_b, OUT_PAD), jnp.bfloat16),
        grid=grid,
        in_specs=[
            pl.BlockSpec((tb, IN_FEATURES), lambda i: (i, 0)),          # x tile
            pl.BlockSpec((IN_FEATURES, HIDDEN_PAD), lambda i: (0, 0)),  # w1 (resident)
            pl.BlockSpec((1, HIDDEN_PAD), lambda i: (0, 0)),            # b1 (resident)
            pl.BlockSpec((HIDDEN_PAD, OUT_PAD), lambda i: (0, 0)),      # w2 (resident)
            pl.BlockSpec((1, OUT_PAD), lambda i: (0, 0)),               # b2 (resident)
        ],
        out_specs=pl.BlockSpec((tb, OUT_PAD), lambda i: (i, 0)),
        compiler_params=pltpu.CompilerParams(
            dimension_semantics=("parallel",)),
        cost_estimate=pl.CostEstimate(
            flops=flops, transcendentals=0, bytes_accessed=bytes_accessed),
    )(x_flat, w1_bf16, b1, w2_bf16, b2)

    return out_padded[:B, :OUT_FEATURES].astype(jnp.float32)


def init_params(key):
    """Deterministic init, PyTorch-Linear-like uniform ranges, (in, out) layout."""
    k1, k2, k3, k4 = jax.random.split(key, 4)
    bound1 = 1.0 / jnp.sqrt(IN_FEATURES)
    bound2 = 1.0 / jnp.sqrt(HIDDEN)
    w1 = jax.random.uniform(k1, (IN_FEATURES, HIDDEN), jnp.float32, -bound1, bound1)
    b1 = jax.random.uniform(k2, (1, HIDDEN), jnp.float32, -bound1, bound1)
    w2 = jax.random.uniform(k3, (HIDDEN, OUT_FEATURES), jnp.float32, -bound2, bound2)
    b2 = jax.random.uniform(k4, (1, OUT_FEATURES), jnp.float32, -bound2, bound2)
    return w1, b1, w2, b2


def prepare_params(w1, b1, w2, b2):
    """Zero-pad HIDDEN->128 / OUT->128 and cast weights to bf16 for the kernel."""
    w1p = jnp.zeros((IN_FEATURES, HIDDEN_PAD), jnp.float32).at[:, :HIDDEN].set(w1)
    b1p = jnp.zeros((1, HIDDEN_PAD), jnp.float32).at[:, :HIDDEN].set(b1)
    w2p = jnp.zeros((HIDDEN_PAD, OUT_PAD), jnp.float32).at[:HIDDEN, :OUT_FEATURES].set(w2)
    b2p = jnp.zeros((1, OUT_PAD), jnp.float32).at[:, :OUT_FEATURES].set(b2)
    return w1p.astype(jnp.bfloat16), b1p, w2p.astype(jnp.bfloat16), b2p


def reference_forward(x_nchw, w1, b1, w2, b2):
    """Pure-JAX reference mirroring the kernel's numerics (bf16 dot operands).

    Tolerance intent: bf16 inputs over a 784-term dot and a bf16 output store
    lose ~3 significant digits -> compare with atol/rtol ~2e-2.
    """
    x = jnp.maximum(x_nchw.reshape(x_nchw.shape[0], -1), 0.0).astype(jnp.bfloat16)
    h = jnp.dot(x, w1.astype(jnp.bfloat16),
                preferred_element_type=jnp.float32) + b1
    h = jnp.maximum(h, 0.0)
    o = jnp.dot(h.astype(jnp.bfloat16), w2.astype(jnp.bfloat16),
                preferred_element_type=jnp.float32) + b2
    return o.astype(jnp.float32)


if __name__ == "__main__":
    key = jax.random.PRNGKey(0)
    kx, kp = jax.random.split(key)

    # Small batch, MNIST-shaped input (B, 1, 28, 28) in NCHW.
    x = jax.random.normal(kx, (2, 1, 28, 28), dtype=jnp.float32)
    w1, b1, w2, b2 = init_params(kp)
    w1p, b1p, w2p, b2p = prepare_params(w1, b1, w2, b2)

    out = ann_fc_forward(x, w1p, b1p, w2p, b2p)
    out = jax.block_until_ready(out)

    ref = reference_forward(x, w1, b1, w2, b2)
    assert out.shape == (2, OUT_FEATURES), out.shape
    assert jnp.allclose(out, ref, atol=2e-2, rtol=2e-2), "mismatch vs reference"

    print("KERNEL_OK")
</pallas_src>

<mosaic_0001>
module attributes {stable_mosaic.version = 11 : i64} {
  func.func @ann_fc_kernel(%arg0: i32, %arg1: memref<16x784xbf16, #tpu.memory_space<vmem>>, %arg2: memref<784x128xbf16, #tpu.memory_space<vmem>>, %arg3: memref<1x128xf32, #tpu.memory_space<vmem>>, %arg4: memref<128x128xbf16, #tpu.memory_space<vmem>>, %arg5: memref<1x128xf32, #tpu.memory_space<vmem>>, %arg6: memref<16x128xbf16, #tpu.memory_space<vmem>>) attributes {dimension_semantics = [#tpu.dimension_semantics<parallel>], iteration_bounds = array<i64: 1>, scalar_prefetch = 0 : i64, scratch_operands = 0 : i64, tpu.core_type = #tpu.core_type<tc>, window_params = [{transform_indices = @transform_0, window_bounds = array<i64: 16, 784>}, {pipeline_mode = #tpu.pipeline_mode<synchronous>, transform_indices = @transform_1, window_bounds = array<i64: 784, 128>}, {pipeline_mode = #tpu.pipeline_mode<synchronous>, transform_indices = @transform_2, window_bounds = array<i64: 1, 128>}, {pipeline_mode = #tpu.pipeline_mode<synchronous>, transform_indices = @transform_3, window_bounds = array<i64: 128, 128>}, {pipeline_mode = #tpu.pipeline_mode<synchronous>, transform_indices = @transform_4, window_bounds = array<i64: 1, 128>}, {transform_indices = @transform_5, window_bounds = array<i64: 16, 128>}]} {
    %c0 = arith.constant 0 : index
    %c0_0 = arith.constant 0 : index
    %0 = vector.load %arg1[%c0, %c0_0] : memref<16x784xbf16, #tpu.memory_space<vmem>>, vector<16x784xbf16>
    %cst = arith.constant 0.000000e+00 : bf16
    %1 = vector.broadcast %cst : bf16 to vector<16x784xbf16>
    %2 = arith.maximumf %0, %1 : vector<16x784xbf16>
    %c0_1 = arith.constant 0 : index
    %c0_2 = arith.constant 0 : index
    %3 = vector.load %arg2[%c0_1, %c0_2] : memref<784x128xbf16, #tpu.memory_space<vmem>>, vector<784x128xbf16>
    %cst_3 = arith.constant dense<0.000000e+00> : vector<16x128xf32>
    %4 = tpu.matmul %2, %3, %cst_3 {dimension_numbers = #tpu.dot_dimension_numbers<[1], [0], [0], [1], [0, 0, 1, 1], [], []>} : vector<16x784xbf16>, vector<784x128xbf16>, vector<16x128xf32> -> vector<16x128xf32>
    %c0_4 = arith.constant 0 : index
    %c0_5 = arith.constant 0 : index
    %5 = vector.load %arg3[%c0_4, %c0_5] : memref<1x128xf32, #tpu.memory_space<vmem>>, vector<1x128xf32>
    %6 = vector.broadcast %5 : vector<1x128xf32> to vector<16x128xf32>
    %7 = arith.addf %4, %6 : vector<16x128xf32>
    %cst_6 = arith.constant 0.000000e+00 : f32
    %8 = vector.broadcast %cst_6 : f32 to vector<16x128xf32>
    %9 = arith.maximumf %7, %8 : vector<16x128xf32>
    %10 = arith.truncf %9 : vector<16x128xf32> to vector<16x128xbf16>
    %c0_7 = arith.constant 0 : index
    %c0_8 = arith.constant 0 : index
    %11 = vector.load %arg4[%c0_7, %c0_8] : memref<128x128xbf16, #tpu.memory_space<vmem>>, vector<128x128xbf16>
    %cst_9 = arith.constant dense<0.000000e+00> : vector<16x128xf32>
    %12 = tpu.matmul %10, %11, %cst_9 {dimension_numbers = #tpu.dot_dimension_numbers<[1], [0], [0], [1], [0, 0, 1, 1], [], []>} : vector<16x128xbf16>, vector<128x128xbf16>, vector<16x128xf32> -> vector<16x128xf32>
    %c0_10 = arith.constant 0 : index
    %c0_11 = arith.constant 0 : index
    %13 = vector.load %arg5[%c0_10, %c0_11] : memref<1x128xf32, #tpu.memory_space<vmem>>, vector<1x128xf32>
    %14 = vector.broadcast %13 : vector<1x128xf32> to vector<16x128xf32>
    %15 = arith.addf %12, %14 : vector<16x128xf32>
    %16 = arith.truncf %15 : vector<16x128xf32> to vector<16x128xbf16>
    %c0_12 = arith.constant 0 : index
    %c0_13 = arith.constant 0 : index
    %17 = vector.load %arg6[%c0_12, %c0_13] : memref<16x128xbf16, #tpu.memory_space<vmem>>, vector<16x128xbf16>
    tpu.vector_store %arg6[%c0_12, %c0_13], %16 {strides = array<i32>} : memref<16x128xbf16, #tpu.memory_space<vmem>>, vector<16x128xbf16>,
    return
  }
  func.func @transform_0(%arg0: i32) -> (i32, i32) {
    %c0_i32 = arith.constant 0 : i32
    %c0_i32_0 = arith.constant 0 : i32
    return %arg0, %c0_i32 : i32, i32
  }
  func.func @transform_1(%arg0: i32) -> (i32, i32) {
    %c0_i32 = arith.constant 0 : i32
    %c0_i32_0 = arith.constant 0 : i32
    %c0_i32_1 = arith.constant 0 : i32
    return %c0_i32, %c0_i32_0 : i32, i32
  }
  func.func @transform_2(%arg0: i32) -> (i32, i32) {
    %c0_i32 = arith.constant 0 : i32
    %c0_i32_0 = arith.constant 0 : i32
    %c0_i32_1 = arith.constant 0 : i32
    return %c0_i32, %c0_i32_0 : i32, i32
  }
  func.func @transform_3(%arg0: i32) -> (i32, i32) {
    %c0_i32 = arith.constant 0 : i32
    %c0_i32_0 = arith.constant 0 : i32
    %c0_i32_1 = arith.constant 0 : i32
    return %c0_i32, %c0_i32_0 : i32, i32
  }
  func.func @transform_4(%arg0: i32) -> (i32, i32) {
    %c0_i32 = arith.constant 0 : i32
    %c0_i32_0 = arith.constant 0 : i32
    %c0_i32_1 = arith.constant 0 : i32
    return %c0_i32, %c0_i32_0 : i32, i32
  }
  func.func @transform_5(%arg0: i32) -> (i32, i32) {
    %c0_i32 = arith.constant 0 : i32
    %c0_i32_0 = arith.constant 0 : i32
    return %arg0, %c0_i32 : i32, i32
  }
}

</mosaic_0001>

<bundles_post_ra>
// kernel: tpu_custom_call.1
= control target key start
LH: loop header
LB: loop body
LE: loop exit
PB: predicated region body
PF: predicated region fallthrough
CT: control target
= control target key end

     0   :  { %10 = vsyncpa [#allocation3], 0  ;;  %s1187_s0 = inlined_call_operand.hbm [shape: bf16[16,784], index: 0, kind: input, shape index: {}]   ;;  %s1188_s1 = inlined_call_operand.hbm [shape: bf16[784,128], index: 1, kind: input, shape index: {}]   ;;  %s1189_s2 = inlined_call_operand.vmem [shape: f32[1,128], index: 2, kind: input, shape index: {}]   ;;  %s1190_s3 = inlined_call_operand.hbm [shape: bf16[128,128], index: 3, kind: input, shape index: {}]   ;;  %s1191_s4 = inlined_call_operand.vmem [shape: f32[1,128], index: 4, kind: input, shape index: {}]   ;;  %s1192_s5 = inlined_call_operand.hbm [shape: bf16[16,128], index: 5, kind: output, shape index: {}]  }
   0x1   :  { %11 = vsyncpa [#allocation6], 0  ;;  %s30_s20 = sshll.u32 %s1188_s1, 4  ;;  %s31_s20 = int_to_ptr.hbm [resolvable:$true] %s30_s20 }
   0x2   :  { %12 = vsyncpa [#allocation4], 0  ;;  %s1122_s21 = smov [#allocation5]   ;;  %s17_s25 = sshll.u32 %s1187_s0, 4  ;;  %s18_s25 = int_to_ptr.hbm [resolvable:$true] %s17_s25 }
   0x3   :  { %s32_s22 = sshll.u32 %s1122_s21, 4  ;;  %s1123_s26 = smov 64   ;;  %s33_s22 = int_to_ptr.vmem [resolvable:$true] %s32_s22 }
   0x4   :  { %s1124_s27 = smov 4   ;;  %s1125_s28 = smov [#allocation2]  }
   0x5   :  { %38 = dma.hbm_to_vmem [thread:$0]  %s31_s20, 6272, %s33_s22, [#allocation6], %s1123_s26, %s1123_s26, %s1124_s27  }
   0x6   :  { %s19_s29 = sshll.u32 %s1125_s28, 4  ;;  %s1126_s1 = smov 448   ;;  %s20_s29 = int_to_ptr.vmem [resolvable:$true] %s19_s29 }
   0x7   :  { %s1127_s30 = smov 28   ;;  %s45_s8 = sshll.u32 %s1190_s3, 4  ;;  %s46_s8 = int_to_ptr.hbm [resolvable:$true] %s45_s8 }
   0x8   :  { %25 = dma.hbm_to_vmem [thread:$0]  %s18_s25, 896, %s20_s29, [#allocation3], %s1126_s1, %s1126_s1, %s1127_s30  }
   0x9   :  { %s1128_s9 = smov [#allocation7]  }
   0xa   :  { %s47_s0 = sshll.u32 %s1128_s9, 4  ;;  %s48_s0 = int_to_ptr.vmem [resolvable:$true] %s47_s0 }
   0xb   :  { %53 = dma.hbm_to_vmem [thread:$0]  %s46_s8, 1024, %s48_s0, [#allocation6], %s1123_s26, %s1123_s26, %s1124_s27  }
   0xc   :  { %1116 = dma.done.wait [#allocation3], 896  }
   0xd   :  { %1117 = vsyncadd [#allocation3], 4294966400 }
   0xe   :  { %1118 = dma.done.wait [#allocation6], 7296  }
   0xf   :  { %1119 = vsyncadd [#allocation6], 4294960000  ;;  %v955_v0 = vld [vmem:[#allocation5 + $0x38] sm:$0xff]  ;;  %v954_v4 = vld [vmem:[#allocation5 + $0x30] sm:$0xff]  ;;  %vm508_vm0 = vcmask 130048   ;;  %s1129_s12 = smov [#allocation8]  }
  0x10   :  { %v963_v1 = vld [vmem:[#allocation5 + $0x78] sm:$0xff]  ;;  %512 = vmatpush.bf16.msra.mxu0 %v955_v0  ;;  %v962_v5 = vld [vmem:[#allocation5 + $0x70] sm:$0xff]  ;;  %v953_v8 = vld [vmem:[#allocation5 + $0x28] sm:$0xff]  ;;  %s703_s13 = sshll.u32 %s1129_s12, 4  ;;  %s705_s16 = sshll.u32 %s1192_s5, 4  ;;  %s704_s13 = int_to_ptr.vmem [resolvable:$true] %s703_s13  ;;  %s706_s16 = int_to_ptr.hbm [resolvable:$true] %s705_s16 }
  0x11   :  { %v971_v2 = vld [vmem:[#allocation5 + $0xb8] sm:$0xff]  ;;  %526 = vmatpush.bf16.msra.mxu1 %v963_v1  ;;  %v970_v6 = vld [vmem:[#allocation5 + $0xb0] sm:$0xff]  ;;  %v961_v9 = vld [vmem:[#allocation5 + $0x68] sm:$0xff] }
  0x12   :  { %v979_v3 = vld [vmem:[#allocation5 + $0xf8] sm:$0xff]  ;;  %540 = vmatpush.bf16.msra.mxu2 %v971_v2  ;;  %v978_v7 = vld [vmem:[#allocation5 + $0xf0] sm:$0xff]  ;;  %v969_v10 = vld [vmem:[#allocation5 + $0xa8] sm:$0xff] }
  0x13   :  { %554 = vmatpush.bf16.msra.mxu3 %v979_v3  ;;  %v977_v11 = vld [vmem:[#allocation5 + $0xe8] sm:$0xff]  ;;  %v952_v12 = vld [vmem:[#allocation5 + $0x20] sm:$0xff]  ;;  %v951_v16 = vld [vmem:[#allocation5 + $0x18] sm:$0xff] }
  0x14   :  { %513 = vmatpush.bf16.msra.mxu0 %v954_v4  ;;  %v960_v13 = vld [vmem:[#allocation5 + $0x60] sm:$0xff]  ;;  %v959_v17 = vld [vmem:[#allocation5 + $0x58] sm:$0xff]  ;;  %v950_v20 = vld [vmem:[#allocation5 + $0x10] sm:$0xff] }
  0x15   :  { %527 = vmatpush.bf16.msra.mxu1 %v962_v5  ;;  %v968_v14 = vld [vmem:[#allocation5 + $0xa0] sm:$0xff]  ;;  %v967_v18 = vld [vmem:[#allocation5 + $0x98] sm:$0xff]  ;;  %v958_v21 = vld [vmem:[#allocation5 + $0x50] sm:$0xff] }
  0x16   :  { %541 = vmatpush.bf16.msra.mxu2 %v970_v6  ;;  %v976_v15 = vld [vmem:[#allocation5 + $0xe0] sm:$0xff]  ;;  %v975_v19 = vld [vmem:[#allocation5 + $0xd8] sm:$0xff]  ;;  %v69_v22 = vld [vmem:[#allocation2] sm:$0xff] }
  0x17   :  { %555 = vmatpush.bf16.msra.mxu3 %v978_v7  ;;  %v73_v23 = vld [vmem:[#allocation2 + $0x1c] sm:$0xff]  ;;  %v966_v24 = vld [vmem:[#allocation5 + $0x90] sm:$0xff]  ;;  %v77_v28 = vunpack.c.l.bf16 %v69_v22  ;;  %v78_v30 = vunpack.c.h.bf16 %v69_v22  ;;  %v987_v46 = vld [vmem:[#allocation5 + $0x138] sm:$0xff] }
  0x18   :  { %514 = vmatpush.bf16.msra.mxu0 %v953_v8  ;;  %v974_v25 = vld [vmem:[#allocation5 + $0xd0] sm:$0xff]  ;;  %v84_v29 = vunpack.c.l.bf16 %v73_v23  ;;  %v85_v31 = vunpack.c.h.bf16 %v73_v23  ;;  %v949_v32 = vld [vmem:[#allocation5 + $0x8] sm:$0xff]  ;;  %v948_v44 = vld [vmem:[#allocation5] sm:$0xff] }
  0x19   :  { %528 = vmatpush.bf16.msra.mxu1 %v961_v9  ;;  %v70_v26 = vld [vmem:[#allocation2 + $0x8] sm:$0xff]  ;;  %v957_v33 = vld [vmem:[#allocation5 + $0x48] sm:$0xff]  ;;  %v91_v40 = vmax.f32 %v77_v28, 0.0  ;;  %v92_v42 = vmax.f32 %v78_v30, 0.0  ;;  %v956_v45 = vld [vmem:[#allocation5 + $0x40] sm:$0xff] }
  0x1a   :  { %542 = vmatpush.bf16.msra.mxu2 %v969_v10  ;;  %v74_v27 = vld [vmem:[#allocation2 + $0x24] sm:$0xff]  ;;  %v79_v36 = vunpack.c.l.bf16 %v70_v26  ;;  %v80_v38 = vunpack.c.h.bf16 %v70_v26  ;;  %v98_v41 = vmax.f32 %v84_v29, 0.0  ;;  %v99_v43 = vmax.f32 %v85_v31, 0.0  ;;  %v995_v47 = vld [vmem:[#allocation5 + $0x178] sm:$0xff]  ;;  %v964_v48 = vld [vmem:[#allocation5 + $0x80] sm:$0xff] }
  0x1b   :  { %556 = vmatpush.bf16.msra.mxu3 %v977_v11  ;;  %v965_v34 = vld [vmem:[#allocation5 + $0x88] sm:$0xff]  ;;  %v86_v37 = vunpack.c.l.bf16 %v74_v27  ;;  %v87_v39 = vunpack.c.h.bf16 %v74_v27  ;;  %v972_v49 = vld [vmem:[#allocation5 + $0xc0] sm:$0xff]  ;;  %v986_v57 = vld [vmem:[#allocation5 + $0x130] sm:$0xff] }
  0x1c   :  { %515 = vmatpush.bf16.msra.mxu0 %v952_v12  ;;  %v973_v35 = vld [vmem:[#allocation5 + $0xc8] sm:$0xff]  ;;  %v93_v50 = vmax.f32 %v79_v36, 0.0  ;;  %v94_v52 = vmax.f32 %v80_v38, 0.0  ;;  %v105_v54 = vpack.c.bf16 %v98_v41, %v91_v40  ;;  %v106_v55 = vpack.c.bf16 %v99_v43, %v92_v42  ;;  %v996_v56 = vld [vmem:[#allocation5 + $0x180] sm:$0xff]  ;;  %v994_v58 = vld [vmem:[#allocation5 + $0x170] sm:$0xff] }
  0x1d   :  { %529 = vmatpush.bf16.msra.mxu1 %v960_v13  ;;  %v100_v51 = vmax.f32 %v86_v37, 0.0  ;;  %v101_v53 = vmax.f32 %v87_v39, 0.0  ;;  %v985_v61 = vld [vmem:[#allocation5 + $0x128] sm:$0xff]  ;;  %v72_v63 = vld [vmem:[#allocation2 + $0x18] sm:$0xf]  ;;  %v983_v5 = vld [vmem:[#allocation5 + $0x118] sm:$0xff] }
  0x1e   :  { %543 = vmatpush.bf16.msra.mxu2 %v968_v14  ;;  %v993_v62 = vld [vmem:[#allocation5 + $0x168] sm:$0xff]  ;;  %v76_v0 = vld [vmem:[#allocation2 + $0x34] sm:$0xf]  ;;  %v984_v1 = vld [vmem:[#allocation5 + $0x120] sm:$0xff]  ;;  %v83_v3 = vunpack.c.l.bf16 %v72_v63 }
  0x1f   :  { %557 = vmatpush.bf16.msra.mxu3 %v976_v15  ;;  %v107_v59 = vpack.c.bf16 %v100_v51, %v93_v50  ;;  %v108_v60 = vpack.c.bf16 %v101_v53, %v94_v52  ;;  %v992_v2 = vld [vmem:[#allocation5 + $0x160] sm:$0xff]  ;;  %v90_v4 = vunpack.c.l.bf16 %v76_v0  ;;  %v991_v6 = vld [vmem:[#allocation5 + $0x158] sm:$0xff]  ;;  %v982_v9 = vld [vmem:[#allocation5 + $0x110] sm:$0xff] }
  0x20   :  { %516 = vmatpush.bf16.msra.mxu0 %v951_v16  ;;  %v97_v7 = vmax.f32 %v83_v3, 0.0  ;;  %v990_v10 = vld [vmem:[#allocation5 + $0x150] sm:$0xff]  ;;  %v71_v11 = vld [vmem:[#allocation2 + $0x10] sm:$0xff]  ;;  %v1004_v28 = vld [vmem:[#allocation7 + $0x38] sm:$0xff] }
  0x21   :  { %530 = vmatpush.bf16.msra.mxu1 %v959_v17  ;;  %v104_v8 = vmax.f32 %v90_v4, 0.0  ;;  %v75_v12 = vld [vmem:[#allocation2 + $0x2c] sm:$0xff]  ;;  %v81_v14 = vunpack.c.l.bf16 %v71_v11  ;;  %v82_v16 = vunpack.c.h.bf16 %v71_v11  ;;  %v1001_v31 = vld [vmem:[#allocation7 + $0x20] sm:$0xff] }
  0x22   :  { %544 = vmatpush.bf16.msra.mxu2 %v967_v18  ;;  %v88_v15 = vunpack.c.l.bf16 %v75_v12  ;;  %v89_v17 = vunpack.c.h.bf16 %v75_v12  ;;  %v981_v18 = vld [vmem:[#allocation5 + $0x108] sm:$0xff]  ;;  %v1003_v29 = vld [vmem:[#allocation7 + $0x30] sm:$0xff]  ;;  %v1002_v30 = vld [vmem:[#allocation7 + $0x28] sm:$0xff] }
  0x23   :  { %558 = vmatpush.bf16.msra.mxu3 %v975_v19  ;;  %v111_v13 = vpack.c.bf16 %v104_v8, %v97_v7  ;;  %v989_v19 = vld [vmem:[#allocation5 + $0x148] sm:$0xff]  ;;  %v96_v22 = vmax.f32 %v82_v16, 0.0 }
  0x24   :  { %517 = vmatpush.bf16.msra.mxu0 %v950_v20  ;;  %v95_v20 = vmax.f32 %v81_v14, 0.0  ;;  %v103_v23 = vmax.f32 %v89_v17, 0.0  ;;  %v997_v38 = vld [vmem:[#allocation7] sm:$0xff] }
  0x25   :  { %531 = vmatpush.bf16.msra.mxu1 %v958_v21  ;;  %v102_v21 = vmax.f32 %v88_v15, 0.0  ;;  %v1018_v39 = vld [vmem:[%s1189_s2] ss:$0 sm:$0xff] }
  0x26   :  { %545 = vmatpush.bf16.msra.mxu2 %v966_v24  ;;  %v980_v24 = vld [vmem:[#allocation5 + $0x100] sm:$0xff]  ;;  %v110_v27 = vpack.c.bf16 %v103_v23, %v96_v22 }
  0x27   :  { %559 = vmatpush.bf16.msra.mxu3 %v974_v25  ;;  %v988_v25 = vld [vmem:[#allocation5 + $0x140] sm:$0xff]  ;;  %v109_v26 = vpack.c.bf16 %v102_v21, %v95_v20 }
  0x28   :  { %518 = vmatpush.bf16.msra.mxu0 %v949_v32  ;;  %v1000_v32 = vld [vmem:[#allocation7 + $0x18] sm:$0xff] }
  0x29   :  { %532 = vmatpush.bf16.msra.mxu1 %v957_v33  ;;  %v999_v33 = vld [vmem:[#allocation7 + $0x10] sm:$0xff] }
  0x2a   :  { %546 = vmatpush.bf16.msra.mxu2 %v965_v34  ;;  %v998_v34 = vld [vmem:[#allocation7 + $0x8] sm:$0xff] }
  0x2b   :  { %560 = vmatpush.bf16.msra.mxu3 %v973_v35 }
  0x2c   :  { %519 = vmatpush.bf16.msra.mxu0 %v948_v44 }
  0x2d   :  { %533 = vmatpush.bf16.msra.mxu1 %v956_v45 }
  0x2e   :  { %547 = vmatpush.bf16.msra.mxu2 %v964_v48 }
  0x2f   :  { %561 = vmatpush.bf16.msra.mxu3 %v972_v49  ;;  %520 = vmatmul.bf16.vlgmr.msra.gmra.mxu0 %v105_v54 }
  0x30   :  { %568 = vmatpush.bf16.msrb.mxu0 %v987_v46  ;;  %534 = vmatmul.bf16.vlgmr.msra.gmra.mxu1 %v106_v55 }
  0x31   :  { %582 = vmatpush.bf16.msrb.mxu1 %v995_v47  ;;  %548 = vmatmul.bf16.vlgmr.msra.gmra.mxu2 %v107_v59 }
  0x32   :  { %603 = vmatpush.bf16.msrb.mxu2 %v996_v56  ;;  %562 = vmatmul.bf16.vlgmr.msra.gmra.mxu3 %v108_v60 }
  0x33   :  { %681 = vmatpush.bf16.msrb.mxu3 %v1004_v28 }
  0x34   :  { %569 = vmatpush.bf16.msrb.mxu0 %v986_v57 }
  0x35   :  { %583 = vmatpush.bf16.msrb.mxu1 %v994_v58 }
  0x37   :  { %682 = vmatpush.bf16.msrb.mxu3 %v1003_v29 }
  0x38   :  { %570 = vmatpush.bf16.msrb.mxu0 %v985_v61 }
  0x39   :  { %584 = vmatpush.bf16.msrb.mxu1 %v993_v62 }
  0x3b   :  { %683 = vmatpush.bf16.msrb.mxu3 %v1002_v30 }
  0x3c   :  { %571 = vmatpush.bf16.msrb.mxu0 %v984_v1 }
  0x3d   :  { %585 = vmatpush.bf16.msrb.mxu1 %v992_v2 }
  0x3f   :  { %684 = vmatpush.bf16.msrb.mxu3 %v1001_v31 }
  0x40   :  { %572 = vmatpush.bf16.msrb.mxu0 %v983_v5  ;;  %v1019_v5 = vld [vmem:[%s1191_s4] ss:$0 sm:$0xff] }
  0x41   :  { %586 = vmatpush.bf16.msrb.mxu1 %v991_v6  ;;  %915 = vmatmul.msk.bf16.vlgmr.msrb.gmra.mxu2 %vm508_vm0, %v111_v13 }
  0x43   :  { %685 = vmatpush.bf16.msrb.mxu3 %v1000_v32 }
  0x44   :  { %573 = vmatpush.bf16.msrb.mxu0 %v982_v9 }
  0x45   :  { %587 = vmatpush.bf16.msrb.mxu1 %v990_v10 }
  0x47   :  { %686 = vmatpush.bf16.msrb.mxu3 %v999_v33 }
  0x48   :  { %574 = vmatpush.bf16.msrb.mxu0 %v981_v18 }
  0x49   :  { %588 = vmatpush.bf16.msrb.mxu1 %v989_v19 }
  0x4b   :  { %687 = vmatpush.bf16.msrb.mxu3 %v998_v34 }
  0x4c   :  { %575 = vmatpush.bf16.msrb.mxu0 %v980_v24 }
  0x4d   :  { %589 = vmatpush.bf16.msrb.mxu1 %v988_v25 }
  0x4f   :  { %576 = vmatmul.bf16.vlgmr.msrb.gmra.mxu0 %v109_v26  ;;  %688 = vmatpush.bf16.msrb.mxu3 %v997_v38 }
  0x50   :  { %590 = vmatmul.bf16.vlgmr.msrb.gmra.mxu1 %v110_v27 }
  0xac   :  { %v521_v35 = vpop.f32.mrf.mxu0 }
  0xad   :  { %v535_v36 = vpop.f32.mrf.mxu1  ;;  %v522_v40 = vadd.f32 %v1018_v39, %v521_v35 }
  0xaf   :  { %v536_v44 = vadd.f32 %v535_v36, %v522_v40 }
  0xb4   :  { %v549_v37 = vpop.f32.mrf.mxu2  ;;  %v523_v41 = vpop.f32.mrf.mxu0 }
  0xb5   :  { %v537_v42 = vpop.f32.mrf.mxu1  ;;  %v563_v45 = vpop.f32.mrf.mxu3  ;;  %v524_v46 = vadd.f32 %v1018_v39, %v523_v41  ;;  %v550_v47 = vadd.f32 %v549_v37, %v536_v44 }
  0xb7   :  { %v538_v48 = vadd.f32 %v537_v42, %v524_v46  ;;  %v564_v51 = vadd.f32 %v563_v45, %v550_v47 }
  0xbc   :  { %v551_v43 = vpop.f32.mrf.mxu2 }
  0xbd   :  { %v552_v53 = vadd.f32 %v551_v43, %v538_v48  ;;  %v565_v55 = vpop.f32.mrf.mxu3 }
  0xbf   :  { %v566_v56 = vadd.f32 %v565_v55, %v552_v53 }
  0xc4   :  { %v605_v52 = vpop.f32.mrf.mxu2 }
  0xcc   :  { %v577_v49 = vpop.f32.mrf.mxu0  ;;  %v607_v63 = vpop.f32.mrf.mxu2 }
  0xcd   :  { %v591_v50 = vpop.f32.mrf.mxu1  ;;  %v578_v54 = vadd.f32 %v577_v49, %v564_v51 }
  0xcf   :  { %v592_v57 = vadd.f32 %v591_v50, %v578_v54 }
  0xd1   :  { %v606_v61 = vadd.f32 %v605_v52, %v592_v57 }
  0xd3   :  { %v610_v1 = vmax.f32 %v606_v61, 0.0 }
  0xd4   :  { %v579_v58 = vpop.f32.mrf.mxu0 }
  0xd5   :  { %v580_v59 = vadd.f32 %v579_v58, %v566_v56  ;;  %v593_v60 = vpop.f32.mrf.mxu1 }
  0xd7   :  { %v594_v62 = vadd.f32 %v593_v60, %v580_v59 }
  0xd9   :  { %v608_v0 = vadd.f32 %v607_v63, %v594_v62 }
  0xdb   :  { %v611_v2 = vmax.f32 %v608_v0, 0.0 }
  0xdd   :  { %v612_v3 = vpack.c.bf16 %v611_v2, %v610_v1 }
  0xdf   :  { %689 = vmatmul.bf16.vlgmr.msrb.gmra.mxu3 %v612_v3 }
 0x162   :  { %v690_v4 = vpop.f32.mrf.mxu3 }
 0x163   :  { %v691_v7 = vadd.f32 %v1019_v5, %v690_v4 }
 0x16a   :  { %v692_v6 = vpop.f32.mrf.mxu3 }
 0x16b   :  { %v693_v8 = vadd.f32 %v1019_v5, %v692_v6 }
 0x16d   :  { %v1008_v9 = vpack.c.bf16 %v693_v8, %v691_v7 }
 0x16f   :  { %1009 = vst [vmem:[#allocation8] sm:$0xff] %v1008_v9  }
 0x170   :  { %711 = dma.vmem_to_hbm [thread:$0]  %s704_s13, 128, %s706_s16, [#allocation4], %s1123_s26, %s1123_s26, %s1124_s27  }
 0x171   :  { %1120 = dma.done.wait [#allocation4], 128  }
 0x172   :  { %1121 = vsyncadd [#allocation4], 4294967168 }
 0x173   :  { %716 = vsyncpa [#allocation3], 1 }
 0x174   :  { %717 = vsyncpa [#allocation6], 1 }
 0x175   :  { %718 = vsyncpa [#allocation4], 1 }

</bundles_post_ra>
